<compile_context>
chip_gen: v7x
topology: tpu7x:2x2x1
jax: 0.10.0
libtpu: 0.0.40
codegen_flags: <defaults>
</compile_context>

<pallas_src>
import functools

import jax
import jax.numpy as jnp
import numpy as np
from jax import lax
from jax.experimental import pallas as pl
from jax.experimental.pallas import tpu as pltpu


def _round_up(n, m):
    return ((n + m - 1) // m) * m


# ---------------------------------------------------------------------------
# pltpu.roll direction probe (one tiny kernel, executed once, cached).  The
# main kernel implements the KxK spatial taps as flat lane rotations; this
# makes it correct under either rotate-direction convention of the backend.
# ---------------------------------------------------------------------------
def _roll_probe_kernel(x_ref, o_ref):
    o_ref[...] = pltpu.roll(x_ref[...], 1, 1)


@functools.lru_cache(maxsize=None)
def _roll_matches_numpy():
    """True iff pltpu.roll(x, +1, axis) == np.roll(x, +1, axis)."""
    x = jnp.broadcast_to(jnp.arange(128, dtype=jnp.float32), (8, 128))
    y = pl.pallas_call(
        _roll_probe_kernel,
        out_shape=jax.ShapeDtypeStruct((8, 128), jnp.float32),
    )(x)
    return bool(np.asarray(y)[0, 0] == 127.0)


# ---------------------------------------------------------------------------
# Fused ConvGRU cell kernel: one grid step per block of b_blk images.
# Activations are (channels, L) with L = b_blk*H*W flattened on lanes.
# ---------------------------------------------------------------------------
def _convgru_kernel(
        x_ref, h_ref, m_ref,
        i2h_w1, i2h_b1, i2h_w2, i2h_b2,
        h2h_w1, h2h_b1, h2h_w2, h2h_b2,
        h2c_w1, h2c_b1, h2c_w2, h2c_b2,
        o_ref,
        *, W, K, L, hid, hid_p, roll_np):
    pad = K // 2

    # x arrives bf16 (halved DMA); widen once so the K*K lane rotations run on
    # the f32 path (exact round trip, known-good on v5e/v6e/v7x).
    x32 = x_ref[...].astype(jnp.float32)          # (cin_p, L)
    h_full = h_ref[...]                           # (hid_p, L) f32
    h = h_full[:hid]                              # (hid,   L)

    def tap_bf16(a32, ti, dh, dw):
        """Spatially shifted tap a[c, b*HW + i*W+j] -> a[c, b*HW + (i+dh)*W+(j+dw)],
        zeroed outside the (per-image) bounds, emitted directly in bf16."""
        d = dh * W + dw
        if d == 0:
            return a32.astype(jnp.bfloat16)
        s = (-d) % L if roll_np else d % L
        t = pltpu.roll(a32, s, 1).astype(jnp.bfloat16)   # XLU lane rotation
        return t * m_ref[ti:ti + 1, :]           # precomputed bf16 boundary mask

    def conv_stack(a32, w1, b1, w2, b2):
        """Fused conv(KxK,'same',zero pad) -> tanh -> conv(1x1).

        a32: (cin, L) f32, cin a multiple of 8 (zero-padded channels).
        w1 : (cout1, K*K*cin) bf16   b1: (cout1, 1) f32
        w2 : (cout2, cout1)   bf16   b2: (cout2, 1) f32
        Returns (cout2, L) f32; spatial/batch stays lane-dense throughout.
        """
        taps = []
        ti = 0
        for dh in range(-pad, pad + 1):
            for dw in range(-pad, pad + 1):
                taps.append(tap_bf16(a32, ti, dh, dw))
                ti += 1
        patch = jnp.concatenate(taps, axis=0)      # (K*K*cin, L) bf16 im2col
        y = jnp.dot(w1[...], patch,
                    preferred_element_type=jnp.float32) + b1[...]
        # bf16 tanh: the result feeds the bf16 1x1 MXU matmul anyway; on
        # v6e/v7x the EUP runs bf16 at ~2x (v5e widens internally).
        t = jnp.tanh(y.astype(jnp.bfloat16))
        return jnp.dot(w2[...], t,
                       preferred_element_type=jnp.float32) + b2[...]

    i2h = conv_stack(x32, i2h_w1, i2h_b1, i2h_w2, i2h_b2)        # (3*hid, L)
    h2h = conv_stack(h_full, h2h_w1, h2h_b1, h2h_w2, h2h_b2)     # (2*hid, L)

    reset = jax.nn.sigmoid(i2h[:hid] + h2h[:hid])
    update = jax.nn.sigmoid(i2h[hid:2 * hid] + h2h[hid:2 * hid])

    rh = reset * h                                               # (hid, L)
    if hid_p > hid:
        # TODO(synk): when hid % 8 != 0, pad the gate channels to hid_p
        # end-to-end (weights/biases/output) instead of this per-step concat.
        rh = jnp.concatenate(
            [rh, jnp.zeros((hid_p - hid, L), jnp.float32)], axis=0)
    h2c = conv_stack(rh, h2c_w1, h2c_b1, h2c_w2, h2c_b2)         # (hid, L)

    cand = jnp.tanh(i2h[2 * hid:] + h2c)
    o_ref[...] = ((1.0 - update) * cand + update * h).astype(o_ref.dtype)


# ---------------------------------------------------------------------------
# Host-side helpers: tap masks, batch-block sizing, VMEM budget.
# ---------------------------------------------------------------------------
def _tap_masks(H, W, K, b_blk):
    """(K*K, b_blk*H*W) bf16 multiplicative masks: 1 where the tap stays
    inside its own image, 0 where the (circular) roll would wrap out."""
    pad = K // 2
    hw = H * W
    r = np.arange(hw) // W
    c = np.arange(hw) % W
    rows = []
    for dh in range(-pad, pad + 1):
        for dw in range(-pad, pad + 1):
            ok = (r + dh >= 0) & (r + dh < H) & (c + dw >= 0) & (c + dw < W)
            rows.append(ok)
    m = np.stack(rows, axis=0).astype(np.float32)       # (K*K, HW)
    m = np.tile(m, (1, b_blk))                          # (K*K, b_blk*HW)
    return jnp.asarray(m, dtype=jnp.bfloat16)


def _choose_batch_block(N, HW, K, cin_p, hid_p):
    """How many images to fold onto the lane axis per grid step."""
    patch_rows = K * K * max(cin_p, hid_p)
    patch_budget = 20 * 1024 * 1024           # bf16 im2col patch (v7x-safe)
    b_fit = max(1, (patch_budget // 2 // patch_rows) // HW)
    b_tgt = max(1, -(-2048 // HW))            # aim for >= ~2048 lanes / step
    b = max(1, min(N, b_fit, b_tgt))
    if N >= 2:
        b = min(b, (N + 1) // 2)              # v7x: keep >= 2 grid steps (2 TCs)
    if (b * HW) % 128 != 0:
        b = N                                 # full-extent lane block (always legal)
    # TODO(synk): if a single image's patch already exceeds the budget, add a
    # spatial grid axis with halo (overlapping index_map) instead of growing
    # the lane block, or switch to per-row-group accumulating matmuls (v7x MRB).
    return b


def _derive_vmem_limit(cin_p, hid_p, hid, K, L, weights, n_mask_rows):
    """Scoped-VMEM request derived from the actual block sizes."""
    act_in = cin_p * L * 2 + hid_p * L * 4          # bf16 x block + f32 h block
    act_out = hid * L * 4
    mask_b = n_mask_rows * L * 2
    w_bytes = sum(int(np.prod(w.shape)) * np.dtype(w.dtype).itemsize
                  for w in weights)
    patch_b = K * K * max(cin_p, hid_p) * L * 2     # largest bf16 transient
    # double-buffered activation blocks + resident weights/masks + headroom
    # for the im2col patch and gate temporaries.
    est = 2 * (act_in + act_out + mask_b) + w_bytes + 4 * patch_b
    try:
        cap = int(pltpu.get_tpu_info().vmem_capacity_bytes)
    except Exception:
        cap = 64 * 1024 * 1024                      # v7x physical; conservative
    return int(min(max(est, 32 * 1024 * 1024), int(cap * 0.8)))


# ---------------------------------------------------------------------------
# Wrapper: NCHW in / NCHW out (PyTorch convention).
# ---------------------------------------------------------------------------
def conv_gru_cell_parallel(kp, x_nchw, h_nchw):
    N, Cin, H, W = x_nchw.shape
    hid, K = kp["hidden"], kp["K"]
    HW = H * W
    cin_p = _round_up(Cin, 8)
    hid_p = _round_up(hid, 8)

    b_blk = _choose_batch_block(N, HW, K, cin_p, hid_p)
    n_blocks = -(-N // b_blk)
    n_pad = n_blocks * b_blk
    L = b_blk * HW

    # NCHW -> channel-major, lane-flat layout (C, N_pad*H*W): the flattened
    # (batch, spatial) axis lands on the 128-lane dimension, so one grid step
    # covers b_blk images and every matmul/store is lane-dense.
    def to_lane_major(a, c, c_pad, dtype):
        a = a.reshape(N, c, HW).astype(dtype)
        if c_pad > c:                         # keep sublane (channel) dim 8-aligned
            a = jnp.pad(a, ((0, 0), (0, c_pad - c), (0, 0)))
        if n_pad > N:                         # pad batch to a whole number of blocks
            a = jnp.pad(a, ((0, n_pad - N), (0, 0), (0, 0)))
        return jnp.transpose(a, (1, 0, 2)).reshape(c_pad, n_pad * HW)

    x_l = to_lane_major(x_nchw, Cin, cin_p, jnp.bfloat16)   # bf16 x: half the DMA
    h_l = to_lane_major(h_nchw, hid, hid_p, jnp.float32)    # f32 h: feeds gate blend

    masks = _tap_masks(H, W, K, b_blk)                      # (K*K, L) bf16

    weights = (kp["i2h_w1"], kp["i2h_b1"], kp["i2h_w2"], kp["i2h_b2"],
               kp["h2h_w1"], kp["h2h_b1"], kp["h2h_w2"], kp["h2h_b2"],
               kp["h2c_w1"], kp["h2c_b1"], kp["h2c_w2"], kp["h2c_b2"])

    kern = functools.partial(
        _convgru_kernel, W=W, K=K, L=L, hid=hid, hid_p=hid_p,
        roll_np=_roll_matches_numpy())

    # Constant index_map => weights / masks are fetched into VMEM once.
    # TODO(synk): single-buffer them (pipeline_mode=pl.Buffered(1)) once that
    # path is verified on the target jaxlib, to free VMEM at large hidden sizes.
    in_specs = ([pl.BlockSpec((cin_p, L), lambda g: (0, g)),
                 pl.BlockSpec((hid_p, L), lambda g: (0, g)),
                 pl.BlockSpec(masks.shape, lambda g: (0, 0))] +
                [pl.BlockSpec(w.shape, lambda g: (0, 0)) for w in weights])

    vmem_limit = _derive_vmem_limit(cin_p, hid_p, hid, K, L, weights,
                                    masks.shape[0])

    out = pl.pallas_call(
        kern,
        out_shape=jax.ShapeDtypeStruct((hid, n_pad * HW), jnp.float32),
        grid=(n_blocks,),
        in_specs=in_specs,
        out_specs=pl.BlockSpec((hid, L), lambda g: (0, g)),
        compiler_params=pltpu.CompilerParams(
            dimension_semantics=("parallel",),
            vmem_limit_bytes=vmem_limit),
    )(x_l, h_l, masks, *weights)

    out = out.reshape(hid, n_pad, HW)
    out = jnp.transpose(out, (1, 0, 2))[:N]
    return out.reshape(N, hid, H, W)


# ---------------------------------------------------------------------------
# Parameters: PyTorch-layout init + packing into the kernel layout.
# ---------------------------------------------------------------------------
def init_params(key, in_ch, hidden, K):
    """PyTorch-layout parameters: OIHW conv weights + 1-D biases."""
    def conv_init(k, cout, cin, ks):
        bound = 1.0 / np.sqrt(cin * ks * ks)
        kw_, kb_ = jax.random.split(k)
        w = jax.random.uniform(kw_, (cout, cin, ks, ks), jnp.float32,
                               -bound, bound)
        b = jax.random.uniform(kb_, (cout,), jnp.float32, -bound, bound)
        return w, b

    keys = jax.random.split(key, 6)
    p = {"hidden": hidden, "K": K}
    p["i2h_w1"], p["i2h_b1"] = conv_init(keys[0], 3 * hidden, in_ch, K)
    p["i2h_w2"], p["i2h_b2"] = conv_init(keys[1], 3 * hidden, 3 * hidden, 1)
    p["h2h_w1"], p["h2h_b1"] = conv_init(keys[2], 2 * hidden, hidden, K)
    p["h2h_w2"], p["h2h_b2"] = conv_init(keys[3], 2 * hidden, 2 * hidden, 1)
    p["h2c_w1"], p["h2c_b1"] = conv_init(keys[4], hidden, hidden, K)
    p["h2c_w2"], p["h2c_b2"] = conv_init(keys[5], hidden, hidden, 1)
    return p


def pack_params(tp):
    """KxK weights -> (Cout, K*K*Cin_pad) bf16 (tap order (kh, kw, ci)),
       1x1 weights -> (Cout, Cin) bf16, biases -> (Cout, 1) f32."""
    def pack_kxk(w):
        cout, cin, kh, kw = w.shape
        cin_p = _round_up(cin, 8)
        w = jnp.transpose(w, (0, 2, 3, 1))                 # (Cout, K, K, Cin)
        w = jnp.pad(w, ((0, 0), (0, 0), (0, 0), (0, cin_p - cin)))
        return w.reshape(cout, kh * kw * cin_p).astype(jnp.bfloat16)

    def pack_1x1(w):
        return w.reshape(w.shape[0], w.shape[1]).astype(jnp.bfloat16)

    def pack_b(b):
        return b.reshape(-1, 1).astype(jnp.float32)

    kp = {"hidden": tp["hidden"], "K": tp["K"]}
    for name in ("i2h", "h2h", "h2c"):
        kp[name + "_w1"] = pack_kxk(tp[name + "_w1"])
        kp[name + "_b1"] = pack_b(tp[name + "_b1"])
        kp[name + "_w2"] = pack_1x1(tp[name + "_w2"])
        kp[name + "_b2"] = pack_b(tp[name + "_b2"])
    return kp


# ---------------------------------------------------------------------------
# Pure-JAX (f32, HIGHEST precision) reference of the PyTorch forward.
# ---------------------------------------------------------------------------
def _ref_conv(x, w, b):
    pad = w.shape[-1] // 2
    y = lax.conv_general_dilated(
        x, w, window_strides=(1, 1), padding=[(pad, pad), (pad, pad)],
        dimension_numbers=("NCHW", "OIHW", "NCHW"),
        precision=lax.Precision.HIGHEST)
    return y + b[None, :, None, None]


def ref_forward(tp, x, h):
    hid = tp["hidden"]

    def stack(a, name):
        t = jnp.tanh(_ref_conv(a, tp[name + "_w1"], tp[name + "_b1"]))
        return _ref_conv(t, tp[name + "_w2"], tp[name + "_b2"])

    i2h = stack(x, "i2h")
    h2h = stack(h, "h2h")
    reset_i, update_i, cand_i = jnp.split(i2h, [hid, 2 * hid], axis=1)
    reset_h, update_h = jnp.split(h2h, [hid], axis=1)
    reset = jax.nn.sigmoid(reset_i + reset_h)
    update = jax.nn.sigmoid(update_i + update_h)
    cand = jnp.tanh(cand_i + stack(reset * h, "h2c"))
    return (1.0 - update) * cand + update * h


if __name__ == "__main__":
    # Shapes consistent with the module: batch=2, in_channels=4,
    # hidden_channels=8, spatial=16x16, kernel_size=3, padding_mode='zeros'.
    N, Cin, Hid, S, K = 2, 4, 8, 16, 3
    key = jax.random.PRNGKey(0)
    kx, kh_, kp_ = jax.random.split(key, 3)
    x = jax.random.normal(kx, (N, Cin, S, S), jnp.float32)
    h0 = 0.5 * jax.random.normal(kh_, (N, Hid, S, S), jnp.float32)

    torch_params = init_params(kp_, Cin, Hid, K)
    kernel_params = pack_params(torch_params)

    out = jax.block_until_ready(conv_gru_cell_parallel(kernel_params, x, h0))
    ref = jax.block_until_ready(ref_forward(torch_params, x, h0))

    assert out.shape == (N, Hid, S, S), out.shape
    err = float(np.max(np.abs(np.asarray(out) - np.asarray(ref))))
    # bf16 MXU operands / bf16 tanh vs f32 HIGHEST reference -> bf16 tolerance.
    if not np.allclose(np.asarray(out), np.asarray(ref), atol=5e-2, rtol=5e-2):
        raise RuntimeError(
            "Pallas ConvGRU output mismatch vs reference, max abs diff = "
            f"{err}")
    print("KERNEL_OK")
</pallas_src>

<mosaic_0001>
module attributes {stable_mosaic.version = 11 : i64} {
  func.func @_roll_probe_kernel(%arg0: memref<8x128xf32, #tpu.memory_space<vmem>>, %arg1: memref<8x128xf32, #tpu.memory_space<vmem>>) attributes {dimension_semantics = [], scalar_prefetch = 0 : i64, scratch_operands = 0 : i64, tpu.core_type = #tpu.core_type<tc>} {
    %c0 = arith.constant 0 : index
    %c0_0 = arith.constant 0 : index
    %0 = vector.load %arg0[%c0, %c0_0] : memref<8x128xf32, #tpu.memory_space<vmem>>, vector<8x128xf32>
    %c1_i32 = arith.constant 1 : i32
    %1 = tpu.dynamic_rotate %0 by %c1_i32 dim 1 : vector<8x128xf32>, i32 -> vector<8x128xf32>
    %c0_1 = arith.constant 0 : index
    %c0_2 = arith.constant 0 : index
    %2 = vector.load %arg1[%c0_1, %c0_2] : memref<8x128xf32, #tpu.memory_space<vmem>>, vector<8x128xf32>
    tpu.vector_store %arg1[%c0_1, %c0_2], %1 {strides = array<i32>} : memref<8x128xf32, #tpu.memory_space<vmem>>, vector<8x128xf32>,
    return
  }
}

</mosaic_0001>

<bundles_post_ra>
// kernel: tpu_custom_call.1
= control target key start
LH: loop header
LB: loop body
LE: loop exit
PB: predicated region body
PF: predicated region fallthrough
CT: control target
= control target key end

     0   :  { %6 = vsyncpa [#allocation3], 0  ;;  %s128_s0 = inlined_call_operand.hbm [shape: f32[8,128], index: 0, kind: input, shape index: {}]   ;;  %s129_s1 = inlined_call_operand.hbm [shape: f32[8,128], index: 1, kind: output, shape index: {}]  }
   0x1   :  { %7 = vsyncpa [#allocation4], 0  ;;  %s91_s6 = smov [#allocation2]   ;;  %s43_s10 = scalar_lea.hbm %s128_s0, 128 }
   0x2   :  { %s14_s7 = sshll.u32 %s91_s6, 4  ;;  %p44_p0 = scmp.ne.s32.totalorder %s128_s0, %s43_s10  ;;  %s15_s7 = int_to_ptr.vmem [resolvable:$true] %s14_s7 }
   0x3   :  { %p47_p1 = scmp.lt.u32.totalorder %s43_s10, %s128_s0 }
   0x5   :  { %p49_p2 = pnand %p47_p1, %p44_p0 }
   0x7   :  { %52 = shalt.err (!%p49_p2)
}
   0x8   :  { %s53_s15 = scalar_lea.vmem %s15_s7, 128  ;;  %p58_p4 = scmp.lt.s32.totalorder %s15_s7, %s15_s7 }
   0x9   :  { %p54_p3 = scmp.ne.s32.totalorder %s15_s7, %s53_s15  ;;  %p59_p5 = scmp.lt.s32.totalorder %s53_s15, %s53_s15 }
   0xb   :  { %p60_p6 = por %p59_p5, %p58_p4 }
   0xd   :  { %p61_p7 = pnand %p60_p6, %p54_p3 }
   0xf   :  { %64 = shalt.err (!%p61_p7)
}
  0x10   :  { %17 = dma.hbm_to_vmem [thread:$0]  %s128_s0, 128, %s15_s7, [#allocation3]  }
  0x11   :  { %87 = dma.done.wait [#allocation3], 128  }
  0x12   :  { %88 = vsyncadd [#allocation3], 4294967168  ;;  %v21_v0 = vld [vmem:[#allocation2] sm:$0xff]  ;;  %s92_s18 = smov 1   ;;  %s93_s19 = smov [#allocation5]  }
  0x13   :  { %22 = vrot.lane.b32.xlu0 %v21_v0, %s92_s18  ;;  %s31_s20 = sshll.u32 %s93_s19, 4  ;;  %s32_s20 = int_to_ptr.vmem [resolvable:$true] %s31_s20 }
  0x14   :  { %s65_s21 = scalar_lea.vmem %s32_s20, 128  ;;  %p70_p9 = scmp.lt.s32.totalorder %s32_s20, %s32_s20 }
  0x15   :  { %p66_p8 = scmp.ne.s32.totalorder %s32_s20, %s65_s21  ;;  %p71_p10 = scmp.lt.s32.totalorder %s65_s21, %s65_s21 }
  0x17   :  { %p72_p11 = por %p71_p10, %p70_p9 }
  0x19   :  { %p73_p12 = pnand %p72_p11, %p66_p8 }
  0x85   :  { %v23_v1 = vpop.permute.xlu0 %22 }
  0x86   :  { %24 = vst [vmem:[#allocation5] sm:$0xff] %v23_v1 }
  0x87   :  { %76 = shalt.err (!%p73_p12)
}
  0x88   :  { %s77_s0 = scalar_lea.hbm %s129_s1, 128 }
  0x89   :  { %p78_p13 = scmp.ne.s32.totalorder %s129_s1, %s77_s0  ;;  %p81_p0 = scmp.lt.u32.totalorder %s77_s0, %s129_s1 }
  0x8b   :  { %p83_p1 = pnand %p81_p0, %p78_p13 }
  0x8d   :  { %86 = shalt.err (!%p83_p1)
}
  0x8e   :  { %34 = dma.vmem_to_hbm [thread:$0]  %s32_s20, 128, %s129_s1, [#allocation4]  }
  0x8f   :  { %89 = dma.done.wait [#allocation4], 128  }
  0x90   :  { %90 = vsyncadd [#allocation4], 4294967168 }
  0x91   :  { %38 = vsyncpa [#allocation3], 1 }
  0x92   :  { %39 = vsyncpa [#allocation4], 1 }

</bundles_post_ra>
